<compile_context>
chip_gen: v7x
topology: tpu7x:2x2x1
jax: 0.10.0
libtpu: 0.0.40
codegen_flags: <defaults>
</compile_context>

<pallas_src>
import functools

import jax
import jax.numpy as jnp
from jax.experimental import pallas as pl
from jax.experimental.pallas import tpu as pltpu


def _round_up(n, m):
    return ((n + m - 1) // m) * m


def mlp_softmax_kernel(x_ref, w1_ref, b1_ref, w2_ref, b2_ref, w3_ref, b3_ref,
                       o_ref):
    x = x_ref[...]                                            # (tb, D)

    # fc1 + ReLU  -> (tb, 64)
    h1 = jnp.dot(x, w1_ref[...], preferred_element_type=jnp.float32)
    h1 = jnp.maximum(h1 + b1_ref[...], 0.0)

    # fc2 + ReLU  -> (tb, 32)
    h2 = jnp.dot(h1, w2_ref[...], preferred_element_type=jnp.float32)
    h2 = jnp.maximum(h2 + b2_ref[...], 0.0)

    # fc3 (logits) -> (tb, C)
    logits = jnp.dot(h2, w3_ref[...], preferred_element_type=jnp.float32)
    logits = logits + b3_ref[...]

    # row-wise softmax over the class axis
    m = jnp.max(logits, axis=-1, keepdims=True)
    e = jnp.exp(logits - m)
    s = jnp.sum(e, axis=-1, keepdims=True)
    r = pl.reciprocal(s, approx=True)      # EUP seed (free slot)
    r = r * (2.0 - s * r)                  # one Newton step -> full f32 accuracy
    o_ref[...] = e * r                     # (tb, C) store, no padding


def simple_nn_forward(x, params, *, tile_b=2048):
    w1, b1, w2, b2, w3, b3 = params
    B, D = x.shape
    C = w3.shape[1]

    # Batch tiling: whole batch in one tile when small; otherwise tile with
    # >= 4 tiles so v7x's two TensorCores both get grid steps ("parallel").
    tb = _round_up(B, 8)
    if tb > tile_b:
        tb = max(8, min(tile_b, _round_up(pl.cdiv(B, 4), 8)))
    grid = (pl.cdiv(B, tb),)               # ragged last tile handled by Pallas

    const = lambda i: (0, 0)  # weights/biases stay VMEM-resident across steps
    out = pl.pallas_call(
        mlp_softmax_kernel,
        out_shape=jax.ShapeDtypeStruct((B, C), jnp.float32),
        grid=grid,
        in_specs=[
            pl.BlockSpec((tb, D), lambda i: (i, 0)),   # x: tiled over batch
            pl.BlockSpec(w1.shape, const),
            pl.BlockSpec(b1.shape, const),
            pl.BlockSpec(w2.shape, const),
            pl.BlockSpec(b2.shape, const),
            pl.BlockSpec(w3.shape, const),
            pl.BlockSpec(b3.shape, const),
        ],
        out_specs=pl.BlockSpec((tb, C), lambda i: (i, 0)),   # C == full last dim
        compiler_params=pltpu.CompilerParams(
            dimension_semantics=("parallel",),          # 2 TCs on v7x
            vmem_limit_bytes=32 * 1024 * 1024,          # safe on v5e/v6e/v7x
        ),
    )(x, w1, b1, w2, b2, w3, b3)

    return out


def init_params(key, input_dim, num_classes):
    """Deterministic init mimicking nn.Linear default (U(-1/sqrt(fan_in), +))."""
    def linear(key, fan_in, fan_out):
        kw, kb = jax.random.split(key)
        bound = 1.0 / jnp.sqrt(fan_in)
        w = jax.random.uniform(kw, (fan_in, fan_out), jnp.float32,
                               minval=-bound, maxval=bound)
        b = jax.random.uniform(kb, (1, fan_out), jnp.float32,
                               minval=-bound, maxval=bound)
        return w, b

    k1, k2, k3 = jax.random.split(key, 3)
    w1, b1 = linear(k1, input_dim, 64)
    w2, b2 = linear(k2, 64, 32)
    w3, b3 = linear(k3, 32, num_classes)
    return (w1, b1, w2, b2, w3, b3)


def reference_forward(x, params):
    w1, b1, w2, b2, w3, b3 = params
    h1 = jnp.maximum(x @ w1 + b1, 0.0)
    h2 = jnp.maximum(h1 @ w2 + b2, 0.0)
    logits = h2 @ w3 + b3
    return jax.nn.softmax(logits, axis=1)


if __name__ == "__main__":
    key = jax.random.PRNGKey(0)
    k_x, k_p, k_x2 = jax.random.split(key, 3)

    batch = 8
    input_dim = 16
    num_classes = 4

    x = jax.random.normal(k_x, (batch, input_dim), jnp.float32)
    params = init_params(k_p, input_dim, num_classes)

    fwd = jax.jit(simple_nn_forward)          # default tile_b=2048, grid=1 here
    out = jax.block_until_ready(fwd(x, params))
    ref = reference_forward(x, params)
    assert out.shape == (batch, num_classes)
    assert jnp.allclose(out, ref, atol=1e-5, rtol=1e-5)
    assert jnp.allclose(jnp.sum(out, axis=1), 1.0, atol=1e-5)

    # Exercise the multi-tile + ragged-last-tile path (grid=4, 232-row tail),
    # i.e. Pallas-side DMA clipping instead of wrapper pad/slice copies.
    big_batch = 1000
    x_big = jax.random.normal(k_x2, (big_batch, input_dim), jnp.float32)
    fwd_tiled = jax.jit(functools.partial(simple_nn_forward, tile_b=256))
    out_big = jax.block_until_ready(fwd_tiled(x_big, params))
    ref_big = reference_forward(x_big, params)
    assert out_big.shape == (big_batch, num_classes)
    assert jnp.allclose(out_big, ref_big, atol=1e-5, rtol=1e-5)
    assert jnp.allclose(jnp.sum(out_big, axis=1), 1.0, atol=1e-5)

    print("KERNEL_OK")
</pallas_src>

<mosaic_0001>
module attributes {stable_mosaic.version = 11 : i64} {
  func.func @mlp_softmax_kernel(%arg0: i32, %arg1: memref<8x16xf32, #tpu.memory_space<vmem>>, %arg2: memref<16x64xf32, #tpu.memory_space<vmem>>, %arg3: memref<1x64xf32, #tpu.memory_space<vmem>>, %arg4: memref<64x32xf32, #tpu.memory_space<vmem>>, %arg5: memref<1x32xf32, #tpu.memory_space<vmem>>, %arg6: memref<32x4xf32, #tpu.memory_space<vmem>>, %arg7: memref<1x4xf32, #tpu.memory_space<vmem>>, %arg8: memref<8x4xf32, #tpu.memory_space<vmem>>) attributes {dimension_semantics = [#tpu.dimension_semantics<parallel>], iteration_bounds = array<i64: 1>, scalar_prefetch = 0 : i64, scratch_operands = 0 : i64, tpu.core_type = #tpu.core_type<tc>, window_params = [{transform_indices = @transform_0, window_bounds = array<i64: 8, 16>}, {pipeline_mode = #tpu.pipeline_mode<synchronous>, transform_indices = @transform_1, window_bounds = array<i64: 16, 64>}, {pipeline_mode = #tpu.pipeline_mode<synchronous>, transform_indices = @transform_2, window_bounds = array<i64: 1, 64>}, {pipeline_mode = #tpu.pipeline_mode<synchronous>, transform_indices = @transform_3, window_bounds = array<i64: 64, 32>}, {pipeline_mode = #tpu.pipeline_mode<synchronous>, transform_indices = @transform_4, window_bounds = array<i64: 1, 32>}, {pipeline_mode = #tpu.pipeline_mode<synchronous>, transform_indices = @transform_5, window_bounds = array<i64: 32, 4>}, {pipeline_mode = #tpu.pipeline_mode<synchronous>, transform_indices = @transform_6, window_bounds = array<i64: 1, 4>}, {transform_indices = @transform_7, window_bounds = array<i64: 8, 4>}]} {
    %c0 = arith.constant 0 : index
    %c0_0 = arith.constant 0 : index
    %0 = vector.load %arg1[%c0, %c0_0] : memref<8x16xf32, #tpu.memory_space<vmem>>, vector<8x16xf32>
    %c0_1 = arith.constant 0 : index
    %c0_2 = arith.constant 0 : index
    %1 = vector.load %arg2[%c0_1, %c0_2] : memref<16x64xf32, #tpu.memory_space<vmem>>, vector<16x64xf32>
    %cst = arith.constant dense<0.000000e+00> : vector<8x64xf32>
    %2 = tpu.matmul %0, %1, %cst {dimension_numbers = #tpu.dot_dimension_numbers<[1], [0], [0], [1], [0, 0, 1, 1], [], []>} : vector<8x16xf32>, vector<16x64xf32>, vector<8x64xf32> -> vector<8x64xf32>
    %c0_3 = arith.constant 0 : index
    %c0_4 = arith.constant 0 : index
    %3 = vector.load %arg3[%c0_3, %c0_4] : memref<1x64xf32, #tpu.memory_space<vmem>>, vector<1x64xf32>
    %4 = vector.broadcast %3 : vector<1x64xf32> to vector<8x64xf32>
    %5 = arith.addf %2, %4 : vector<8x64xf32>
    %cst_5 = arith.constant 0.000000e+00 : f32
    %6 = vector.broadcast %cst_5 : f32 to vector<8x64xf32>
    %7 = arith.maximumf %5, %6 : vector<8x64xf32>
    %c0_6 = arith.constant 0 : index
    %c0_7 = arith.constant 0 : index
    %8 = vector.load %arg4[%c0_6, %c0_7] : memref<64x32xf32, #tpu.memory_space<vmem>>, vector<64x32xf32>
    %cst_8 = arith.constant dense<0.000000e+00> : vector<8x32xf32>
    %9 = tpu.matmul %7, %8, %cst_8 {dimension_numbers = #tpu.dot_dimension_numbers<[1], [0], [0], [1], [0, 0, 1, 1], [], []>} : vector<8x64xf32>, vector<64x32xf32>, vector<8x32xf32> -> vector<8x32xf32>
    %c0_9 = arith.constant 0 : index
    %c0_10 = arith.constant 0 : index
    %10 = vector.load %arg5[%c0_9, %c0_10] : memref<1x32xf32, #tpu.memory_space<vmem>>, vector<1x32xf32>
    %11 = vector.broadcast %10 : vector<1x32xf32> to vector<8x32xf32>
    %12 = arith.addf %9, %11 : vector<8x32xf32>
    %cst_11 = arith.constant 0.000000e+00 : f32
    %13 = vector.broadcast %cst_11 : f32 to vector<8x32xf32>
    %14 = arith.maximumf %12, %13 : vector<8x32xf32>
    %c0_12 = arith.constant 0 : index
    %c0_13 = arith.constant 0 : index
    %15 = vector.load %arg6[%c0_12, %c0_13] : memref<32x4xf32, #tpu.memory_space<vmem>>, vector<32x4xf32>
    %cst_14 = arith.constant dense<0.000000e+00> : vector<8x4xf32>
    %16 = tpu.matmul %14, %15, %cst_14 {dimension_numbers = #tpu.dot_dimension_numbers<[1], [0], [0], [1], [0, 0, 1, 1], [], []>} : vector<8x32xf32>, vector<32x4xf32>, vector<8x4xf32> -> vector<8x4xf32>
    %c0_15 = arith.constant 0 : index
    %c0_16 = arith.constant 0 : index
    %17 = vector.load %arg7[%c0_15, %c0_16] : memref<1x4xf32, #tpu.memory_space<vmem>>, vector<1x4xf32>
    %18 = vector.broadcast %17 : vector<1x4xf32> to vector<8x4xf32>
    %19 = arith.addf %16, %18 : vector<8x4xf32>
    %cst_17 = arith.constant dense<0xFF800000> : vector<8xf32>
    %20 = vector.multi_reduction <maximumf>, %19, %cst_17 [1] : vector<8x4xf32> to vector<8xf32>
    %21 = vector.shape_cast %20 : vector<8xf32> to vector<8x1xf32>
    %22 = vector.broadcast %21 : vector<8x1xf32> to vector<8x4xf32>
    %23 = arith.subf %19, %22 : vector<8x4xf32>
    %24 = math.exp %23 : vector<8x4xf32>
    %cst_18 = arith.constant dense<0.000000e+00> : vector<8xf32>
    %25 = vector.multi_reduction <add>, %24, %cst_18 [1] : vector<8x4xf32> to vector<8xf32>
    %26 = vector.shape_cast %25 : vector<8xf32> to vector<8x1xf32>
    %27 = tpu.reciprocal %26 {approx = true} : vector<8x1xf32> -> vector<8x1xf32>
    %28 = arith.mulf %26, %27 : vector<8x1xf32>
    %cst_19 = arith.constant 2.000000e+00 : f32
    %29 = vector.broadcast %cst_19 : f32 to vector<8x1xf32>
    %30 = arith.subf %29, %28 : vector<8x1xf32>
    %31 = arith.mulf %27, %30 : vector<8x1xf32>
    %32 = vector.broadcast %31 : vector<8x1xf32> to vector<8x4xf32>
    %33 = arith.mulf %24, %32 : vector<8x4xf32>
    %c0_20 = arith.constant 0 : index
    %c0_21 = arith.constant 0 : index
    %34 = vector.load %arg8[%c0_20, %c0_21] : memref<8x4xf32, #tpu.memory_space<vmem>>, vector<8x4xf32>
    tpu.vector_store %arg8[%c0_20, %c0_21], %33 {strides = array<i32>} : memref<8x4xf32, #tpu.memory_space<vmem>>, vector<8x4xf32>,
    return
  }
  func.func @transform_0(%arg0: i32) -> (i32, i32) {
    %c0_i32 = arith.constant 0 : i32
    %c0_i32_0 = arith.constant 0 : i32
    return %arg0, %c0_i32 : i32, i32
  }
  func.func @transform_1(%arg0: i32) -> (i32, i32) {
    %c0_i32 = arith.constant 0 : i32
    %c0_i32_0 = arith.constant 0 : i32
    %c0_i32_1 = arith.constant 0 : i32
    return %c0_i32, %c0_i32_0 : i32, i32
  }
  func.func @transform_2(%arg0: i32) -> (i32, i32) {
    %c0_i32 = arith.constant 0 : i32
    %c0_i32_0 = arith.constant 0 : i32
    %c0_i32_1 = arith.constant 0 : i32
    return %c0_i32, %c0_i32_0 : i32, i32
  }
  func.func @transform_3(%arg0: i32) -> (i32, i32) {
    %c0_i32 = arith.constant 0 : i32
    %c0_i32_0 = arith.constant 0 : i32
    %c0_i32_1 = arith.constant 0 : i32
    return %c0_i32, %c0_i32_0 : i32, i32
  }
  func.func @transform_4(%arg0: i32) -> (i32, i32) {
    %c0_i32 = arith.constant 0 : i32
    %c0_i32_0 = arith.constant 0 : i32
    %c0_i32_1 = arith.constant 0 : i32
    return %c0_i32, %c0_i32_0 : i32, i32
  }
  func.func @transform_5(%arg0: i32) -> (i32, i32) {
    %c0_i32 = arith.constant 0 : i32
    %c0_i32_0 = arith.constant 0 : i32
    %c0_i32_1 = arith.constant 0 : i32
    return %c0_i32, %c0_i32_0 : i32, i32
  }
  func.func @transform_6(%arg0: i32) -> (i32, i32) {
    %c0_i32 = arith.constant 0 : i32
    %c0_i32_0 = arith.constant 0 : i32
    %c0_i32_1 = arith.constant 0 : i32
    return %c0_i32, %c0_i32_0 : i32, i32
  }
  func.func @transform_7(%arg0: i32) -> (i32, i32) {
    %c0_i32 = arith.constant 0 : i32
    %c0_i32_0 = arith.constant 0 : i32
    return %arg0, %c0_i32 : i32, i32
  }
}

</mosaic_0001>

<bundles_post_ra>
// kernel: simple_nn_forward.1
= control target key start
LH: loop header
LB: loop body
LE: loop exit
PB: predicated region body
PF: predicated region fallthrough
CT: control target
= control target key end

     0   :  { %v394_v0 = vmov 0.0|0.0   ;;  %vm395_vm0 = vmmov 0   ;;  %v396_v3 = vmov 0.0   ;;  %vm36_vm1 = vcmask 130048   ;;  %s500_s1 = inlined_call_operand.vmem [shape: f32[16,64], index: 1, kind: input, shape index: {}]   ;;  %s501_s3 = inlined_call_operand.vmem [shape: f32[64,32], index: 3, kind: input, shape index: {}]   ;;  %s502_s0 = inlined_call_operand.vmem [shape: f32[8,16], index: 0, kind: input, shape index: {}]   ;;  %s503_s5 = inlined_call_operand.vmem [shape: f32[32,4], index: 5, kind: input, shape index: {}]   ;;  %s504_s2 = inlined_call_operand.vmem [shape: f32[1,64], index: 2, kind: input, shape index: {}]   ;;  %s505_s4 = inlined_call_operand.vmem [shape: f32[1,32], index: 4, kind: input, shape index: {}]   ;;  %s506_s6 = inlined_call_operand.vmem [shape: f32[1,4], index: 6, kind: input, shape index: {}]   ;;  %s507_s7 = inlined_call_operand.vmem [shape: f32[8,4], index: 7, kind: output, shape index: {}]  }
   0x1   :  { %366 = vmatprep.subr.bf16.mxu0 %v394_v0  ;;  %v27_v1 = vld [vmem:[%s500_s1] sm:$0xff]  ;;  %v28_v2 = vld [vmem:[%s500_s1 + $0x8] sm:$0xff]  ;;  %333 = vmatprep.mubr.msk.f32.mxu0 %vm395_vm0, %v396_v3  ;;  %v113_v7 = vld [vmem:[%s501_s3 + $0x10] sm:$0xff]  ;;  %vm126_vm2 = vcmask 523264   ;;  %vm212_vm3 = vcmask 261120   ;;  %vm286_vm4 = vcmask 31744  }
   0x2   :  { %v367_v4 = vpack.c.bf16 %v28_v2, %v27_v1  ;;  %369 = vmatprep.subr.bf16.mxu1 %v394_v0  ;;  %v111_v5 = vld [vmem:[%s501_s3] sm:$0xff]  ;;  %v112_v6 = vld [vmem:[%s501_s3 + $0x8] sm:$0xff]  ;;  %352 = vmatprep.mubr.msk.f32.mxu1 %vm395_vm0, %v396_v3  ;;  %v114_v9 = vld [vmem:[%s501_s3 + $0x18] sm:$0xff] }
   0x3   :  { %v370_v8 = vpack.c.bf16 %v112_v6, %v111_v5  ;;  %v26_v10 = vld [vmem:[%s502_s0] sm:$0xff]  ;;  %v373_v11 = vpack.c.bf16 %v114_v9, %v113_v7  ;;  %v116_v13 = vld [vmem:[%s501_s3 + $0x28] sm:$0xff]  ;;  %v117_v15 = vld [vmem:[%s501_s3 + $0x30] sm:$0xff] }
   0x4   :  { %368 = vmatpush3.bf16.msra.mxu0 %v367_v4  ;;  %v115_v12 = vld [vmem:[%s501_s3 + $0x20] sm:$0xff]  ;;  %v118_v16 = vld [vmem:[%s501_s3 + $0x38] sm:$0xff]  ;;  %v202_v19 = vld [vmem:[%s503_s5 + $0x8] sm:$0xff] }
   0x5   :  { %371 = vmatpush3.bf16.msra.mxu1 %v370_v8  ;;  %381 = vmatprep.subr.bf16.mxu0 %v394_v0  ;;  %v376_v14 = vpack.c.bf16 %v116_v13, %v115_v12  ;;  %v379_v17 = vpack.c.bf16 %v118_v16, %v117_v15  ;;  %v201_v18 = vld [vmem:[%s503_s5] sm:$0xff]  ;;  %v203_v26 = vld [vmem:[%s503_s5 + $0x10] sm:$0xff]  ;;  %v204_v27 = vld [vmem:[%s503_s5 + $0x18] sm:$0xff] }
   0x6   :  { %372 = vmatprep.subr.bf16.mxu1 %v394_v0  ;;  %v382_v20 = vpack.c.bf16 %v202_v19, %v201_v18  ;;  %v306_v21 = vld [vmem:[%s504_s2] ss:$0 sm:$0xff]  ;;  %v385_v28 = vpack.c.bf16 %v204_v27, %v203_v26 }
   0x7   :  { %334 = vmatmul.mubr.msk.f32.vlgmr.msra.gmra.mrb[0].mxu0 %vm36_vm1, %v26_v10  ;;  %v308_v29 = vld [vmem:[%s505_s4] ss:$0 sm:$0xff] }
   0x8   :  { %363 = vmatprep.mubr.msk.f32.mxu0 %vm395_vm0, %v396_v3  ;;  %383 = vmatpush3.bf16.msra.mxu0 %v382_v20  ;;  %v310_v34 = vld [vmem:[%s506_s6] ss:$0 sm:$0xff] }
   0x9   :  { %374 = vmatpush3.bf16.msra.mxu1 %v373_v11  ;;  %384 = vmatprep.subr.bf16.mxu0 %v394_v0 }
   0xa   :  { %375 = vmatprep.subr.bf16.mxu1 %v394_v0 }
   0xc   :  { %386 = vmatpush3.bf16.msra.mxu0 %v385_v28 }
   0xd   :  { %377 = vmatpush3.bf16.msra.mxu1 %v376_v14 }
   0xe   :  { %378 = vmatprep.subr.bf16.mxu1 %v394_v0 }
  0x11   :  { %380 = vmatpush3.bf16.msra.mxu1 %v379_v17 }
  0xda   :  { %v106_v22 = vpop.f32.mrb[0].mxu0 }
  0xdb   :  { %v107_v23 = vadd.f32 %v306_v21, %v106_v22  ;;  %v335_v24 = vpop.f32.mrb[1].mxu0 }
  0xdd   :  { %v110_v25 = vmax.f32 %v107_v23, 0.0 }
  0xdf   :  { %353 = vmatmul.mubr.msk.f32.vlgmr.msra.gmra.mrb[0].mxu1 %vm126_vm2, %v110_v25 }
 0x1b2   :  { %v196_v30 = vpop.f32.mrb[0].mxu1 }
 0x1b3   :  { %v197_v31 = vadd.f32 %v308_v29, %v196_v30  ;;  %v354_v32 = vpop.f32.mrb[1].mxu1 }
 0x1b5   :  { %v200_v33 = vmax.f32 %v197_v31, 0.0 }
 0x1b7   :  { %364 = vmatmul.mubr.msk.f32.vlgmr.msra.gmra.mrb[2].mxu0 %vm212_vm3, %v200_v33 }
 0x28a   :  { %v282_v35 = vpop.f32.mrb[2].mxu0 }
 0x28b   :  { %v283_v36 = vadd.f32 %v310_v34, %v282_v35  ;;  %v365_v37 = vpop.f32.mrb[3].mxu0 }
 0x28d   :  { %v287_v38 = vsel %vm286_vm4, %v283_v36, -inf }
 0x28e   :  { %288 = vmax.xlane.f32.xlu0 %v287_v38 }
 0x31b   :  { %v289_v39 = vpop.xlane.xlu0 %288 }
 0x31c   :  { %v290_v40 = vsub.f32 %v283_v36, %v289_v39 }
 0x31e   :  { %v291_v41 = vmul.f32 1.442695, %v290_v40 }
 0x320   :  { %390 = vpow2.f32 %v291_v41 }
 0x32a   :  { %v391_v42 = vpop.eup %390 }
 0x32b   :  { %v293_v43 = vsel %vm286_vm4, %v391_v42, 0.0 }
 0x32c   :  { %294 = vadd.xlane.f32.xlu0 %v293_v43 }
 0x3b9   :  { %v295_v44 = vpop.xlane.xlu0 %294 }
 0x3ba   :  { %392 = vrcp.f32 %v295_v44 }
 0x3c4   :  { %v393_v45 = vpop.eup %392 }
 0x3c5   :  { %v297_v46 = vmul.f32 %v393_v45, %v295_v44 }
 0x3c7   :  { %v298_v47 = vsub.f32 2.0, %v297_v46 }
 0x3c9   :  { %v299_v48 = vmul.f32 %v393_v45, %v298_v47 }
 0x3cb   :  { %v300_v49 = vmul.f32 %v391_v42, %v299_v48 }
 0x3cd   :  { %301 = vst.msk [vmem:[%s507_s7] sm:$0xff] %vm286_vm4, %v300_v49 }

</bundles_post_ra>
